<compile_context>
chip_gen: v6e
topology: v6e:2x2x1
jax: 0.10.0
libtpu: 0.0.40
codegen_flags: <defaults>
</compile_context>

<pallas_src>
import math

import numpy as np
import jax
import jax.numpy as jnp
from jax.experimental import pallas as pl
from jax.experimental.pallas import tpu as pltpu


def _interp_matrix_T(n_in: int, n_out: int, dtype) -> jnp.ndarray:
    """Transposed 1-D bilinear interpolation matrix (n_in, n_out),
    align_corners=True semantics.  Built with numpy on the host so it is a
    compile-time constant (no on-device one_hot/iota per call)."""
    if n_in == 1:
        m = np.ones((n_out, n_in), dtype=np.float32)
    else:
        idx = np.arange(n_out, dtype=np.float64)
        src = idx * (n_in - 1) / (n_out - 1)          # align_corners=True mapping
        i0 = np.clip(np.floor(src).astype(np.int64), 0, n_in - 1)
        i1 = np.clip(i0 + 1, 0, n_in - 1)
        frac = (src - i0).astype(np.float32)
        m = np.zeros((n_out, n_in), dtype=np.float32)
        m[np.arange(n_out), i0] += 1.0 - frac
        m[np.arange(n_out), i1] += frac
    return jnp.asarray(m.T, dtype=dtype)              # (n_in, n_out)


def _sublane(itemsize: int) -> int:
    return {4: 8, 2: 16, 1: 32}.get(itemsize, 8)


def _vmem_capacity_bytes() -> int:
    """Per-core VMEM capacity; conservative fallback if the query fails."""
    try:
        return int(pltpu.get_tpu_info().vmem_capacity_bytes)
    except Exception:
        return 64 * 1024 * 1024   # v7x-sized fallback: safe on every generation


def _pick_block_batch(B: int, H: int, W: int, itemsize: int, budget: int):
    """Choose how many images to process per grid step from a VMEM budget.

    Footprint model counts double-buffered in/out blocks plus the f32
    intermediates and corner-turn copies created inside the body, with
    dtype-correct sublane padding (8 rows for f32, 16 for bf16)."""
    sub = _sublane(itemsize)

    def padded(rows, cols, isz, s):   # VMEM footprint after (s, 128) tile padding
        return (-(-rows // s) * s) * (-(-cols // 128) * 128) * isz

    H2, W2 = 2 * H, 2 * W
    per_img = 2 * padded(H, W, itemsize, sub)       # input block, double buffered
    per_img += 2 * padded(H2, W2, itemsize, sub)    # output block, double buffered
    per_img += padded(W, H, itemsize, sub)          # input corner turn
    per_img += 2 * padded(W, H2, 4, 8)              # f32 height-pass result + its turn
    per_img += padded(H2, W2, 4, 8)                 # f32 width-pass result before cast

    tb = max(1, budget // per_img)
    tb = min(tb, B)

    # Output block second-minor dim is tb*H2: keep it a multiple of the sublane
    # tile unless one block already covers the whole batch (then it equals the
    # full array dim and the (8,128) rule is satisfied automatically).
    m = sub // math.gcd(H2, sub)
    if tb < B:
        tb = max(m, (tb // m) * m)
        tb = min(tb, B)
    return tb, m


def _upsample_kernel(x_ref, wht_ref, wwt_ref, o_ref):
    # x_ref:   (TB, H, W)     input image block (input dtype)
    # wht_ref: (H, H2)        pre-transposed height interpolation matrix (f32)
    # wwt_ref: (W, W2)        pre-transposed width interpolation matrix (f32)
    # o_ref:   (TB*H2, W2)    output block, already in its final flat 2-D layout
    tb, h, w = x_ref.shape
    h2 = wht_ref.shape[1]

    x = x_ref[...]                                                    # (TB, H, W)

    # Corner turn on the *pre-upsample* data: smallest array, input dtype.
    xt = jnp.swapaxes(x, 1, 2).reshape(tb * w, h)                     # (TB*W, H)

    # Height pass: one flat matmul, M = TB*W, f32 accumulation.
    y = jnp.dot(xt, wht_ref[...], preferred_element_type=jnp.float32)  # (TB*W, H2)

    # Corner turn on the half-upsampled intermediate (still W wide, not W2).
    yt = jnp.swapaxes(y.reshape(tb, w, h2), 1, 2).reshape(tb * h2, w)  # (TB*H2, W)

    # Width pass: one flat matmul, M = TB*H2; the result IS the output block
    # layout, so the store needs no epilogue transpose/relayout.
    z = jnp.dot(yt, wwt_ref[...], preferred_element_type=jnp.float32)  # (TB*H2, W2)
    o_ref[...] = z.astype(o_ref.dtype)


def bilinear_upsample(x: jnp.ndarray) -> jnp.ndarray:
    """x: (N, C, H, W) -> (N, C, 2H, 2W), bilinear, align_corners=True."""
    N, C, H, W = x.shape
    H2, W2 = 2 * H, 2 * W
    B = N * C
    itemsize = jnp.dtype(x.dtype).itemsize

    # Interpolation weights in f32 so both passes accumulate in f32 even for
    # bf16 activations (matches PyTorch's f32 interpolation arithmetic).
    wht = _interp_matrix_T(H, H2, jnp.float32)    # (H, H2)
    wwt = _interp_matrix_T(W, W2, jnp.float32)    # (W, W2)

    vmem_cap = _vmem_capacity_bytes()
    big_vmem = vmem_cap >= 100 * 1024 * 1024          # v5e / v6e: 128 MiB, single TC
    budget = (64 if big_vmem else 20) * 1024 * 1024
    vmem_limit = (96 if big_vmem else 48) * 1024 * 1024

    tb, m = _pick_block_batch(B, H, W, itemsize, budget)
    nb = pl.cdiv(B, tb)

    # On the 2-TensorCore / 64-MiB-VMEM chip, prefer an even number of grid
    # steps so the "parallel" axis load-balances across both cores.
    if (not big_vmem) and nb > 1 and nb % 2 == 1:
        cand = -(-B // (nb + 1))                 # ceil
        cand = max(m, -(-cand // m) * m)         # round up to sublane-aligned tb
        if 0 < cand <= tb:
            new_nb = -(-B // cand)
            if new_nb % 2 == 0:
                tb, nb = cand, new_nb

    b_pad = nb * tb
    xb = x.reshape(B, H, W)
    if b_pad != B:
        xb = jnp.pad(xb, ((0, b_pad - B), (0, 0), (0, 0)))

    # Mem-bound kernel: dominated by the 4x-input-sized output writeback.
    cost = pl.CostEstimate(
        flops=2 * b_pad * H * W * H2 + 2 * b_pad * H2 * W * W2,
        transcendentals=0,
        bytes_accessed=(b_pad * H * W + b_pad * H2 * W2) * itemsize
        + (H * H2 + W * W2) * 4,
    )

    # Note: for very small maps (W2 < 128) the output stores are lane-masked;
    # block-diagonal lane packing would fix that but needs an output-sized
    # unpack transpose in XLA, which costs more HBM traffic than it saves here.
    out = pl.pallas_call(
        _upsample_kernel,
        out_shape=jax.ShapeDtypeStruct((b_pad * H2, W2), x.dtype),
        grid_spec=pltpu.PrefetchScalarGridSpec(
            num_scalar_prefetch=0,
            grid=(nb,),
            in_specs=[
                pl.BlockSpec((tb, H, W), lambda b: (b, 0, 0)),
                pl.BlockSpec((H, H2), lambda b: (0, 0)),   # resident across steps
                pl.BlockSpec((W, W2), lambda b: (0, 0)),   # resident across steps
            ],
            out_specs=pl.BlockSpec((tb * H2, W2), lambda b: (b, 0)),
        ),
        compiler_params=pltpu.CompilerParams(
            dimension_semantics=("parallel",),
            vmem_limit_bytes=vmem_limit,
        ),
        cost_estimate=cost,
    )(xb, wht, wwt)

    out = out.reshape(b_pad, H2, W2)
    if b_pad != B:
        out = out[:B]
    return out.reshape(N, C, H2, W2)


def _reference_bilinear(x: jnp.ndarray) -> jnp.ndarray:
    """Gather-based reference (align_corners=True) for correctness check."""
    N, C, H, W = x.shape
    H_out, W_out = 2 * H, 2 * W

    ys = jnp.arange(H_out, dtype=jnp.float32) * (H - 1) / (H_out - 1)
    xs = jnp.arange(W_out, dtype=jnp.float32) * (W - 1) / (W_out - 1)
    y0 = jnp.clip(jnp.floor(ys).astype(jnp.int32), 0, H - 1)
    y1 = jnp.clip(y0 + 1, 0, H - 1)
    x0 = jnp.clip(jnp.floor(xs).astype(jnp.int32), 0, W - 1)
    x1 = jnp.clip(x0 + 1, 0, W - 1)
    fy = (ys - y0.astype(jnp.float32))[:, None]       # (H_out, 1)
    fx = (xs - x0.astype(jnp.float32))[None, :]       # (1, W_out)

    g = lambda yi, xi: x[:, :, yi, :][:, :, :, xi]    # (N, C, H_out, W_out)
    top = g(y0, x0) * (1 - fx) + g(y0, x1) * fx
    bot = g(y1, x0) * (1 - fx) + g(y1, x1) * fx
    return top * (1 - fy) + bot * fy


if __name__ == "__main__":
    key = jax.random.PRNGKey(0)
    x = jax.random.normal(key, (2, 4, 16, 16), dtype=jnp.float32)

    upsample = jax.jit(bilinear_upsample)
    out = jax.block_until_ready(upsample(x))

    ref = _reference_bilinear(x)
    assert out.shape == (2, 4, 32, 32), out.shape
    assert jnp.allclose(out, ref, atol=1e-5, rtol=1e-5), "mismatch vs reference"

    print("KERNEL_OK")
</pallas_src>

<mosaic_0001>
module attributes {stable_mosaic.version = 11 : i64} {
  func.func @_upsample_kernel(%arg0: i32, %arg1: memref<8x16x16xf32, #tpu.memory_space<vmem>>, %arg2: memref<16x32xf32, #tpu.memory_space<vmem>>, %arg3: memref<16x32xf32, #tpu.memory_space<vmem>>, %arg4: memref<256x32xf32, #tpu.memory_space<vmem>>) attributes {dimension_semantics = [#tpu.dimension_semantics<parallel>], iteration_bounds = array<i64: 1>, scalar_prefetch = 0 : i64, scratch_operands = 0 : i64, tpu.core_type = #tpu.core_type<tc>, window_params = [{transform_indices = @transform_0, window_bounds = array<i64: 8, 16, 16>}, {pipeline_mode = #tpu.pipeline_mode<synchronous>, transform_indices = @transform_1, window_bounds = array<i64: 16, 32>}, {pipeline_mode = #tpu.pipeline_mode<synchronous>, transform_indices = @transform_2, window_bounds = array<i64: 16, 32>}, {transform_indices = @transform_3, window_bounds = array<i64: 256, 32>}]} {
    %c0 = arith.constant 0 : index
    %c0_0 = arith.constant 0 : index
    %c0_1 = arith.constant 0 : index
    %0 = vector.load %arg1[%c0, %c0_0, %c0_1] : memref<8x16x16xf32, #tpu.memory_space<vmem>>, vector<8x16x16xf32>
    %1 = tpu.transpose %0, [0, 2, 1] : vector<8x16x16xf32> -> vector<8x16x16xf32>
    %2 = vector.shape_cast %1 : vector<8x16x16xf32> to vector<128x16xf32>
    %c0_2 = arith.constant 0 : index
    %c0_3 = arith.constant 0 : index
    %3 = vector.load %arg2[%c0_2, %c0_3] : memref<16x32xf32, #tpu.memory_space<vmem>>, vector<16x32xf32>
    %cst = arith.constant dense<0.000000e+00> : vector<128x32xf32>
    %4 = tpu.matmul %2, %3, %cst {dimension_numbers = #tpu.dot_dimension_numbers<[1], [0], [0], [1], [0, 0, 1, 1], [], []>} : vector<128x16xf32>, vector<16x32xf32>, vector<128x32xf32> -> vector<128x32xf32>
    %5 = vector.shape_cast %4 : vector<128x32xf32> to vector<8x16x32xf32>
    %6 = tpu.transpose %5, [0, 2, 1] : vector<8x16x32xf32> -> vector<8x32x16xf32>
    %7 = vector.shape_cast %6 : vector<8x32x16xf32> to vector<256x16xf32>
    %c0_4 = arith.constant 0 : index
    %c0_5 = arith.constant 0 : index
    %8 = vector.load %arg3[%c0_4, %c0_5] : memref<16x32xf32, #tpu.memory_space<vmem>>, vector<16x32xf32>
    %cst_6 = arith.constant dense<0.000000e+00> : vector<256x32xf32>
    %9 = tpu.matmul %7, %8, %cst_6 {dimension_numbers = #tpu.dot_dimension_numbers<[1], [0], [0], [1], [0, 0, 1, 1], [], []>} : vector<256x16xf32>, vector<16x32xf32>, vector<256x32xf32> -> vector<256x32xf32>
    %c0_7 = arith.constant 0 : index
    %c0_8 = arith.constant 0 : index
    %10 = vector.load %arg4[%c0_7, %c0_8] : memref<256x32xf32, #tpu.memory_space<vmem>>, vector<256x32xf32>
    tpu.vector_store %arg4[%c0_7, %c0_8], %9 {strides = array<i32>} : memref<256x32xf32, #tpu.memory_space<vmem>>, vector<256x32xf32>,
    return
  }
  func.func @transform_0(%arg0: i32) -> (i32, i32, i32) {
    %c0_i32 = arith.constant 0 : i32
    %c0_i32_0 = arith.constant 0 : i32
    %c0_i32_1 = arith.constant 0 : i32
    return %arg0, %c0_i32, %c0_i32_0 : i32, i32, i32
  }
  func.func @transform_1(%arg0: i32) -> (i32, i32) {
    %c0_i32 = arith.constant 0 : i32
    %c0_i32_0 = arith.constant 0 : i32
    %c0_i32_1 = arith.constant 0 : i32
    return %c0_i32, %c0_i32_0 : i32, i32
  }
  func.func @transform_2(%arg0: i32) -> (i32, i32) {
    %c0_i32 = arith.constant 0 : i32
    %c0_i32_0 = arith.constant 0 : i32
    %c0_i32_1 = arith.constant 0 : i32
    return %c0_i32, %c0_i32_0 : i32, i32
  }
  func.func @transform_3(%arg0: i32) -> (i32, i32) {
    %c0_i32 = arith.constant 0 : i32
    %c0_i32_0 = arith.constant 0 : i32
    return %arg0, %c0_i32 : i32, i32
  }
}

</mosaic_0001>

<bundles_post_ra>
// kernel: bilinear_upsample.1
= control target key start
LH: loop header
LB: loop body
LE: loop exit
PB: predicated region body
PF: predicated region fallthrough
CT: control target
= control target key end

     0   :  { %8 = vsyncpa [#allocation3], 0  ;;  %s1561_s0 = inlined_call_operand.hbm [shape: f32[8,16,16], index: 0, kind: input, shape index: {}]   ;;  %s1562_s1 = inlined_call_operand.hbm [shape: f32[16,32], index: 1, kind: input, shape index: {}, may-alias: {1,2}]   ;;  %s1563_s2 = inlined_call_operand.hbm [shape: f32[16,32], index: 2, kind: input, shape index: {}, may-alias: {1,2}]   ;;  %s1564_s3 = inlined_call_operand.hbm [shape: f32[256,32], index: 3, kind: output, shape index: {}]  }
   0x1   :  { %9 = vsyncpa [#allocation6], 0 }
   0x2   :  { %10 = vsyncpa [#allocation4], 0  ;;  %s1431_s12 = smov [#allocation5]   ;;  %s1432_s14 = smov [#allocation2]  }
   0x3   :  { %s28_s13 = sshll.u32 %s1431_s12, 4  ;;  %s16_s15 = sshll.u32 %s1432_s14, 4  ;;  %s29_s13 = int_to_ptr.vmem [resolvable:$true] %s28_s13  ;;  %s17_s15 = int_to_ptr.vmem [resolvable:$true] %s16_s15 }
   0x4   :  { %s1353_s16 = scalar_lea.vmem %s29_s13, 256  ;;  %p1358_p1 = scmp.lt.s32.totalorder %s29_s13, %s29_s13 }
   0x5   :  { %p1354_p0 = scmp.ne.s32.totalorder %s29_s13, %s1353_s16  ;;  %p1359_p2 = scmp.lt.s32.totalorder %s1353_s16, %s1353_s16 }
   0x7   :  { %p1360_p3 = por %p1359_p2, %p1358_p1 }
   0x9   :  { %p1361_p4 = pnand %p1360_p3, %p1354_p0 }
   0xb   :  { %1364 = shalt.err (!%p1361_p4)
}
   0xc   :  { %s1433_s17 = smov 128   ;;  %s1434_s18 = smov 8  }
   0xd   :  { %34 = dma.hbm_to_vmem [thread:$0]  %s1562_s1, 256, %s29_s13, [#allocation6], %s1433_s17, %s1433_s17, %s1434_s18  }
   0xe   :  { %s1373_s21 = scalar_lea.vmem %s17_s15, 2048  ;;  %p1378_p6 = scmp.lt.s32.totalorder %s17_s15, %s17_s15 }
   0xf   :  { %p1374_p5 = scmp.ne.s32.totalorder %s17_s15, %s1373_s21  ;;  %p1379_p7 = scmp.lt.s32.totalorder %s1373_s21, %s1373_s21 }
  0x11   :  { %p1380_p8 = por %p1379_p7, %p1378_p6 }
  0x13   :  { %p1381_p9 = pnand %p1380_p8, %p1374_p5 }
  0x15   :  { %1384 = shalt.err (!%p1381_p9)
}
  0x16   :  { %22 = dma.hbm_to_vmem [thread:$0]  %s1561_s0, 2048, %s17_s15, [#allocation3], %s1433_s17, %s1433_s17, %s1434_s18  }
  0x17   :  { %s1435_s24 = smov [#allocation7]  }
  0x18   :  { %s40_s25 = sshll.u32 %s1435_s24, 4  ;;  %s41_s25 = int_to_ptr.vmem [resolvable:$true] %s40_s25 }
  0x19   :  { %s1393_s26 = scalar_lea.vmem %s41_s25, 256  ;;  %p1398_p11 = scmp.lt.s32.totalorder %s41_s25, %s41_s25 }
  0x1a   :  { %p1394_p10 = scmp.ne.s32.totalorder %s41_s25, %s1393_s26  ;;  %p1399_p12 = scmp.lt.s32.totalorder %s1393_s26, %s1393_s26 }
  0x1c   :  { %p1400_p13 = por %p1399_p12, %p1398_p11 }
  0x1e   :  { %p1401_p0 = pnand %p1400_p13, %p1394_p10 }
  0x20   :  { %1404 = shalt.err (!%p1401_p0)
}
  0x21   :  { %46 = dma.hbm_to_vmem [thread:$0]  %s1563_s2, 256, %s41_s25, [#allocation6], %s1433_s17, %s1433_s17, %s1434_s18  }
  0x22   :  { %1425 = dma.done.wait [#allocation3], 2048  }
  0x23   :  { %1426 = vsyncadd [#allocation3], 4294965248 }
  0x24   :  { %1427 = dma.done.wait [#allocation6], 512  }
  0x25   :  { %1428 = vsyncadd [#allocation6], 4294966784  ;;  %v56_v0 = vld [vmem:[#allocation2] sm:$0xff]  ;;  %v58_v1 = vld [vmem:[#allocation2 + $0x10] sm:$0xff]  ;;  %vm330_vm0 = vcmask 130048   ;;  %vm1103_vm1 = vcmask 261120  }
  0x26   :  { %72 = vxpose.xlu0.b32.start [1/2] (short) (narrow) %v56_v0, 16  ;;  %104 = vxpose.xlu1.b32.start [1/2] (short) (narrow) %v58_v1, 16  ;;  %v57_v2 = vld [vmem:[#allocation2 + $0x8] sm:$0xff]  ;;  %v59_v3 = vld [vmem:[#allocation2 + $0x18] sm:$0xff]  ;;  %v328_v5 = vld [vmem:[#allocation5] sm:$0xff]  ;;  %s1436_s0 = smov [#allocation8]  }
  0x27   :  { %v329_v4 = vld [vmem:[#allocation5 + $0x8] sm:$0xff]  ;;  %v60_v6 = vld [vmem:[#allocation2 + $0x20] sm:$0xff]  ;;  %v62_v7 = vld [vmem:[#allocation2 + $0x30] sm:$0xff]  ;;  %s1141_s2 = sshll.u32 %s1436_s0, 4  ;;  %s1142_s2 = int_to_ptr.vmem [resolvable:$true] %s1141_s2 }
  0x28   :  { %1254 = vmatprep.subr.mxu0 %v329_v4  ;;  %v61_v8 = vld [vmem:[#allocation2 + $0x28] sm:$0xff]  ;;  %v63_v9 = vld [vmem:[#allocation2 + $0x38] sm:$0xff]  ;;  %v64_v10 = vld [vmem:[#allocation2 + $0x40] sm:$0xff]  ;;  %s1405_s28 = scalar_lea.vmem %s1142_s2, 4096  ;;  %p1410_p2 = scmp.lt.s32.totalorder %s1142_s2, %s1142_s2 }
  0x29   :  { %1255 = vmatpush3.msra.mxu0 %v329_v4  ;;  %v66_v11 = vld [vmem:[#allocation2 + $0x50] sm:$0xff]  ;;  %v65_v12 = vld [vmem:[#allocation2 + $0x48] sm:$0xff]  ;;  %v67_v13 = vld [vmem:[#allocation2 + $0x58] sm:$0xff]  ;;  %p1406_p1 = scmp.ne.s32.totalorder %s1142_s2, %s1405_s28  ;;  %p1411_p3 = scmp.lt.s32.totalorder %s1405_s28, %s1405_s28 }
  0x2a   :  { %73 = vxpose.xlu0.b32.end [2/2] (short) (narrow) %v57_v2, 16  ;;  %105 = vxpose.xlu1.b32.end [2/2] (short) (narrow) %v59_v3, 16  ;;  %v68_v14 = vld [vmem:[#allocation2 + $0x60] sm:$0xff]  ;;  %v70_v15 = vld [vmem:[#allocation2 + $0x70] sm:$0xff]  ;;  %v69_v16 = vld [vmem:[#allocation2 + $0x68] sm:$0xff] }
  0x2b   :  { %1256 = vmatprep.subr.mxu0 %v328_v5  ;;  %v71_v17 = vld [vmem:[#allocation2 + $0x78] sm:$0xff]  ;;  %v780_v41 = vld [vmem:[#allocation7] sm:$0xff]  ;;  %p1412_p4 = por %p1411_p3, %p1410_p2 }
  0x2c   :  { %1257 = vmatpush3.msra.mxu0 %v328_v5  ;;  %v781_v38 = vld [vmem:[#allocation7 + $0x8] sm:$0xff] }
  0x2d   :  { %1334 = vmatprep.subr.mxu1 %v781_v38  ;;  %1282 = vmatprep.subr.mxu0 %v781_v38  ;;  %p1413_p5 = pnand %p1412_p4, %p1406_p1 }
  0x2e   :  { %136 = vxpose.xlu0.b32.start [1/2] (short) (narrow) %v60_v6, 16  ;;  %168 = vxpose.xlu1.b32.start [1/2] (short) (narrow) %v62_v7, 16 }
  0x2f   :  { %1336 = vmatpush3.msra.mxu1 %v781_v38 }
  0x30   :  { %1335 = vmatprep.subr.mxu1 %v780_v41 }
  0x31   :  { %1337 = vmatpush3.msra.mxu1 %v780_v41 }
  0x32   :  { %137 = vxpose.xlu0.b32.end [2/2] (short) (narrow) %v61_v8, 16  ;;  %169 = vxpose.xlu1.b32.end [2/2] (short) (narrow) %v63_v9, 16 }
  0x36   :  { %200 = vxpose.xlu0.b32.start [1/2] (short) (narrow) %v64_v10, 16  ;;  %232 = vxpose.xlu1.b32.start [1/2] (short) (narrow) %v66_v11, 16 }
  0x3a   :  { %201 = vxpose.xlu0.b32.end [2/2] (short) (narrow) %v65_v12, 16  ;;  %233 = vxpose.xlu1.b32.end [2/2] (short) (narrow) %v67_v13, 16 }
  0x3e   :  { %264 = vxpose.xlu0.b32.start [1/2] (short) (narrow) %v68_v14, 16  ;;  %296 = vxpose.xlu1.b32.start [1/2] (short) (narrow) %v70_v15, 16 }
  0x42   :  { %265 = vxpose.xlu0.b32.end [2/2] (short) (narrow) %v69_v16, 16  ;;  %297 = vxpose.xlu1.b32.end [2/2] (short) (narrow) %v71_v17, 16 }
  0xa2   :  { %v88_v18 = vpop.trf.xlu0  ;;  %v120_v19 = vpop.trf.xlu1 }
  0xa3   :  { %1258 = vmatprep.mubr.msk.f32.mxu0 %vm330_vm0, %v88_v18 }
  0xa6   :  { %v89_v20 = vpop.trf.xlu0  ;;  %v121_v21 = vpop.trf.xlu1 }
  0xa7   :  { %1259 = vmatmul.mubr.msk.f32.vlgmr.msra.gmra.mxu0 %vm330_vm0, %v89_v20 }
  0xa8   :  { %1261 = vmatprep.mubr.msk.f32.mxu0 %vm330_vm0, %v120_v19  ;;  %1283 = vmatpush3.msra.mxu0 %v781_v38 }
  0xa9   :  { %1284 = vmatprep.subr.mxu0 %v780_v41 }
  0xaa   :  { %v152_v22 = vpop.trf.xlu0  ;;  %v184_v23 = vpop.trf.xlu1  ;;  %1285 = vmatpush3.msra.mxu0 %v780_v41 }
  0xab   :  { %1262 = vmatmul.mubr.msk.f32.gmra.mxu0 %vm330_vm0, %v121_v21 }
  0xac   :  { %1264 = vmatprep.mubr.msk.f32.mxu0 %vm330_vm0, %v152_v22 }
  0xae   :  { %v153_v24 = vpop.trf.xlu0  ;;  %v185_v25 = vpop.trf.xlu1 }
  0xaf   :  { %1265 = vmatmul.mubr.msk.f32.gmra.mxu0 %vm330_vm0, %v153_v24 }
  0xb0   :  { %1267 = vmatprep.mubr.msk.f32.mxu0 %vm330_vm0, %v184_v23 }
  0xb2   :  { %v216_v26 = vpop.trf.xlu0  ;;  %v248_v27 = vpop.trf.xlu1 }
  0xb3   :  { %1268 = vmatmul.mubr.msk.f32.gmra.mxu0 %vm330_vm0, %v185_v25 }
  0xb4   :  { %1270 = vmatprep.mubr.msk.f32.mxu0 %vm330_vm0, %v216_v26 }
  0xb6   :  { %v217_v28 = vpop.trf.xlu0  ;;  %v249_v29 = vpop.trf.xlu1 }
  0xb7   :  { %1271 = vmatmul.mubr.msk.f32.gmra.mxu0 %vm330_vm0, %v217_v28 }
  0xb8   :  { %1273 = vmatprep.mubr.msk.f32.mxu0 %vm330_vm0, %v248_v27 }
  0xba   :  { %v280_v30 = vpop.trf.xlu0  ;;  %v312_v31 = vpop.trf.xlu1 }
  0xbb   :  { %1274 = vmatmul.mubr.msk.f32.gmra.mxu0 %vm330_vm0, %v249_v29 }
  0xbc   :  { %1276 = vmatprep.mubr.msk.f32.mxu0 %vm330_vm0, %v280_v30 }
  0xbe   :  { %v281_v32 = vpop.trf.xlu0  ;;  %v313_v33 = vpop.trf.xlu1 }
  0xbf   :  { %1277 = vmatmul.mubr.msk.f32.gmra.mxu0 %vm330_vm0, %v281_v32 }
  0xc0   :  { %1279 = vmatprep.mubr.msk.f32.mxu0 %vm330_vm0, %v312_v31 }
  0xc3   :  { %1280 = vmatmul.mubr.msk.f32.gmra.mxu0 %vm330_vm0, %v313_v33 }
 0x167   :  { %v1260_v34 = vpop.f32.mrf.mxu0 }
 0x169   :  { %v445_v35 = vpop.f32.mrf.mxu0 }
 0x16b   :  { %v1263_v36 = vpop.f32.mrf.mxu0 }
 0x16d   :  { %v455_v37 = vpop.f32.mrf.mxu0 }
 0x16f   :  { %v1266_v39 = vpop.f32.mrf.mxu0 }
 0x171   :  { %v465_v40 = vpop.f32.mrf.mxu0 }
 0x172   :  { %588 = vxpose.xlu0.b32.start [1/2] (short) (narrow) %v465_v40, 32 }
 0x173   :  { %v1269_v42 = vpop.f32.mrf.mxu0 }
 0x175   :  { %v475_v43 = vpop.f32.mrf.mxu0 }
 0x176   :  { %589 = vxpose.xlu0.b32.end [2/2] (short) (narrow) %v1266_v39, 32  ;;  %620 = vxpose.xlu1.b32.start [1/2] (short) (narrow) %v475_v43, 32 }
 0x177   :  { %v1272_v44 = vpop.f32.mrf.mxu0 }
 0x179   :  { %v485_v45 = vpop.f32.mrf.mxu0 }
 0x17a   :  { %621 = vxpose.xlu1.b32.end [2/2] (short) (narrow) %v1269_v42, 32 }
 0x17b   :  { %v1275_v46 = vpop.f32.mrf.mxu0 }
 0x17d   :  { %v495_v47 = vpop.f32.mrf.mxu0 }
 0x17f   :  { %652 = vxpose.xlu0.b32.start [1/2] (short) (narrow) %v485_v45, 32  ;;  %v1278_v48 = vpop.f32.mrf.mxu0 }
 0x181   :  { %v505_v49 = vpop.f32.mrf.mxu0 }
 0x183   :  { %653 = vxpose.xlu0.b32.end [2/2] (short) (narrow) %v1272_v44, 32  ;;  %684 = vxpose.xlu1.b32.start [1/2] (short) (narrow) %v495_v47, 32  ;;  %v1281_v50 = vpop.f32.mrf.mxu0 }
 0x185   :  { %v515_v51 = vpop.f32.mrf.mxu0 }
 0x187   :  { %685 = vxpose.xlu1.b32.end [2/2] (short) (narrow) %v1275_v46, 32 }
 0x18c   :  { %524 = vxpose.xlu0.b32.start [1/2] (short) (narrow) %v445_v35, 32 }
 0x190   :  { %525 = vxpose.xlu0.b32.end [2/2] (short) (narrow) %v1260_v34, 32  ;;  %716 = vxpose.xlu1.b32.start [1/2] (short) (narrow) %v505_v49, 32 }
 0x194   :  { %717 = vxpose.xlu1.b32.end [2/2] (short) (narrow) %v1278_v48, 32 }
 0x199   :  { %556 = vxpose.xlu0.b32.start [1/2] (short) (narrow) %v455_v37, 32 }
 0x19d   :  { %557 = vxpose.xlu0.b32.end [2/2] (short) (narrow) %v1263_v36, 32  ;;  %748 = vxpose.xlu1.b32.start [1/2] (short) (narrow) %v515_v51, 32 }
 0x1a1   :  { %749 = vxpose.xlu1.b32.end [2/2] (short) (narrow) %v1281_v50, 32 }
 0x1ee   :  { %v604_v52 = vpop.trf.xlu0 }
 0x1ef   :  { %1298 = vmatprep.mubr.msk.f32.mxu1 %vm330_vm0, %v604_v52 }
 0x1f2   :  { %v636_v53 = vpop.trf.xlu1  ;;  %v605_v54 = vpop.trf.xlu0 }
 0x1f3   :  { %1299 = vmatmul.mubr.msk.f32.vlgmr.msra.gmra.mxu1 %vm330_vm0, %v605_v54 }
 0x1f6   :  { %v637_v55 = vpop.trf.xlu1  ;;  %v606_v56 = vpop.trf.xlu0 }
 0x1f7   :  { %1301 = vmatprep.mubr.msk.f32.mxu1 %vm330_vm0, %v606_v56 }
 0x1fa   :  { %v638_v57 = vpop.trf.xlu1  ;;  %v607_v58 = vpop.trf.xlu0 }
 0x1fb   :  { %1302 = vmatmul.mubr.msk.f32.gmra.mxu1 %vm330_vm0, %v607_v58 }
 0x1fc   :  { %1304 = vmatprep.mubr.msk.f32.mxu1 %vm330_vm0, %v636_v53 }
 0x1fe   :  { %v639_v59 = vpop.trf.xlu1  ;;  %v668_v60 = vpop.trf.xlu0 }
 0x1ff   :  { %1305 = vmatmul.mubr.msk.f32.gmra.mxu1 %vm330_vm0, %v637_v55 }
 0x200   :  { %1307 = vmatprep.mubr.msk.f32.mxu1 %vm330_vm0, %v638_v57 }
 0x202   :  { %v700_v61 = vpop.trf.xlu1  ;;  %v669_v62 = vpop.trf.xlu0 }
 0x203   :  { %1308 = vmatmul.mubr.msk.f32.gmra.mxu1 %vm330_vm0, %v639_v59 }
 0x204   :  { %1310 = vmatprep.mubr.msk.f32.mxu1 %vm330_vm0, %v668_v60 }
 0x206   :  { %v701_v63 = vpop.trf.xlu1  ;;  %v670_v0 = vpop.trf.xlu0 }
 0x207   :  { %1311 = vmatmul.mubr.msk.f32.gmra.mxu1 %vm330_vm0, %v669_v62 }
 0x208   :  { %1313 = vmatprep.mubr.msk.f32.mxu1 %vm330_vm0, %v670_v0 }
 0x20a   :  { %v702_v1 = vpop.trf.xlu1  ;;  %v671_v2 = vpop.trf.xlu0 }
 0x20b   :  { %1314 = vmatmul.mubr.msk.f32.gmra.mxu1 %vm330_vm0, %v671_v2 }
 0x20c   :  { %1316 = vmatprep.mubr.msk.f32.mxu1 %vm330_vm0, %v700_v61 }
 0x20e   :  { %v703_v3 = vpop.trf.xlu1  ;;  %v540_v4 = vpop.trf.xlu0 }
 0x20f   :  { %1317 = vmatmul.mubr.msk.f32.gmra.mxu1 %vm330_vm0, %v701_v63  ;;  %1286 = vmatprep.mubr.msk.f32.mxu0 %vm330_vm0, %v540_v4 }
 0x210   :  { %1319 = vmatprep.mubr.msk.f32.mxu1 %vm330_vm0, %v702_v1 }
 0x212   :  { %v732_v5 = vpop.trf.xlu1  ;;  %v541_v6 = vpop.trf.xlu0 }
 0x213   :  { %1320 = vmatmul.mubr.msk.f32.gmra.mxu1 %vm330_vm0, %v703_v3  ;;  %1287 = vmatmul.mubr.msk.f32.vlgmr.msra.gmra.mxu0 %vm330_vm0, %v541_v6 }
 0x214   :  { %1322 = vmatprep.mubr.msk.f32.mxu1 %vm330_vm0, %v732_v5 }
 0x216   :  { %v733_v7 = vpop.trf.xlu1  ;;  %v542_v8 = vpop.trf.xlu0 }
 0x217   :  { %1323 = vmatmul.mubr.msk.f32.gmra.mxu1 %vm330_vm0, %v733_v7  ;;  %1289 = vmatprep.mubr.msk.f32.mxu0 %vm330_vm0, %v542_v8 }
 0x21a   :  { %v734_v9 = vpop.trf.xlu1  ;;  %v543_v10 = vpop.trf.xlu0 }
 0x21b   :  { %1325 = vmatprep.mubr.msk.f32.mxu1 %vm330_vm0, %v734_v9  ;;  %1290 = vmatmul.mubr.msk.f32.gmra.mxu0 %vm330_vm0, %v543_v10 }
 0x21e   :  { %v735_v11 = vpop.trf.xlu1  ;;  %v572_v12 = vpop.trf.xlu0 }
 0x21f   :  { %1326 = vmatmul.mubr.msk.f32.gmra.mxu1 %vm330_vm0, %v735_v11  ;;  %1292 = vmatprep.mubr.msk.f32.mxu0 %vm330_vm0, %v572_v12 }
 0x222   :  { %v764_v13 = vpop.trf.xlu1  ;;  %v573_v14 = vpop.trf.xlu0 }
 0x223   :  { %1328 = vmatprep.mubr.msk.f32.mxu1 %vm330_vm0, %v764_v13  ;;  %1293 = vmatmul.mubr.msk.f32.gmra.mxu0 %vm330_vm0, %v573_v14 }
 0x226   :  { %v765_v15 = vpop.trf.xlu1  ;;  %v574_v16 = vpop.trf.xlu0 }
 0x227   :  { %1329 = vmatmul.mubr.msk.f32.gmra.mxu1 %vm330_vm0, %v765_v15  ;;  %1295 = vmatprep.mubr.msk.f32.mxu0 %vm330_vm0, %v574_v16 }
 0x22a   :  { %v766_v17 = vpop.trf.xlu1  ;;  %v575_v18 = vpop.trf.xlu0 }
 0x22b   :  { %1331 = vmatprep.mubr.msk.f32.mxu1 %vm330_vm0, %v766_v17  ;;  %1296 = vmatmul.mubr.msk.f32.gmra.mxu0 %vm330_vm0, %v575_v18 }
 0x22e   :  { %v767_v19 = vpop.trf.xlu1 }
 0x22f   :  { %1332 = vmatmul.mubr.msk.f32.gmra.mxu1 %vm330_vm0, %v767_v19 }
 0x2b3   :  { %v1300_v20 = vpop.f32.mrf.mxu1 }
 0x2b4   :  { %1113 = vst.msk [vmem:[#allocation8 + $0x48] sm:$0xff] %vm1103_vm1, %v1300_v20 }
 0x2b5   :  { %v984_v21 = vpop.f32.mrf.mxu1 }
 0x2b6   :  { %1112 = vst.msk [vmem:[#allocation8 + $0x40] sm:$0xff] %vm1103_vm1, %v984_v21 }
 0x2bb   :  { %v1303_v22 = vpop.f32.mrf.mxu1 }
 0x2bc   :  { %1115 = vst.msk [vmem:[#allocation8 + $0x58] sm:$0xff] %vm1103_vm1, %v1303_v22 }
 0x2bd   :  { %v994_v23 = vpop.f32.mrf.mxu1 }
 0x2be   :  { %1114 = vst.msk [vmem:[#allocation8 + $0x50] sm:$0xff] %vm1103_vm1, %v994_v23 }
 0x2bf   :  { %v1306_v24 = vpop.f32.mrf.mxu1 }
 0x2c0   :  { %1117 = vst.msk [vmem:[#allocation8 + $0x68] sm:$0xff] %vm1103_vm1, %v1306_v24 }
 0x2c1   :  { %v1004_v25 = vpop.f32.mrf.mxu1 }
 0x2c2   :  { %1116 = vst.msk [vmem:[#allocation8 + $0x60] sm:$0xff] %vm1103_vm1, %v1004_v25 }
 0x2c3   :  { %v1309_v26 = vpop.f32.mrf.mxu1 }
 0x2c4   :  { %1119 = vst.msk [vmem:[#allocation8 + $0x78] sm:$0xff] %vm1103_vm1, %v1309_v26 }
 0x2c5   :  { %v1014_v27 = vpop.f32.mrf.mxu1 }
 0x2c6   :  { %1118 = vst.msk [vmem:[#allocation8 + $0x70] sm:$0xff] %vm1103_vm1, %v1014_v27 }
 0x2c7   :  { %v1312_v28 = vpop.f32.mrf.mxu1 }
 0x2c8   :  { %1121 = vst.msk [vmem:[#allocation8 + $0x88] sm:$0xff] %vm1103_vm1, %v1312_v28 }
 0x2c9   :  { %v1024_v29 = vpop.f32.mrf.mxu1 }
 0x2ca   :  { %1120 = vst.msk [vmem:[#allocation8 + $0x80] sm:$0xff] %vm1103_vm1, %v1024_v29 }
 0x2cb   :  { %v1315_v30 = vpop.f32.mrf.mxu1 }
 0x2cc   :  { %1123 = vst.msk [vmem:[#allocation8 + $0x98] sm:$0xff] %vm1103_vm1, %v1315_v30 }
 0x2cd   :  { %v1034_v31 = vpop.f32.mrf.mxu1 }
 0x2ce   :  { %1122 = vst.msk [vmem:[#allocation8 + $0x90] sm:$0xff] %vm1103_vm1, %v1034_v31 }
 0x2cf   :  { %v1318_v32 = vpop.f32.mrf.mxu1 }
 0x2d0   :  { %1125 = vst.msk [vmem:[#allocation8 + $0xa8] sm:$0xff] %vm1103_vm1, %v1318_v32 }
 0x2d1   :  { %v1044_v33 = vpop.f32.mrf.mxu1 }
 0x2d2   :  { %1124 = vst.msk [vmem:[#allocation8 + $0xa0] sm:$0xff] %vm1103_vm1, %v1044_v33 }
 0x2d3   :  { %v1321_v34 = vpop.f32.mrf.mxu1  ;;  %v1288_v35 = vpop.f32.mrf.mxu0 }
 0x2d4   :  { %1127 = vst.msk [vmem:[#allocation8 + $0xb8] sm:$0xff] %vm1103_vm1, %v1321_v34  ;;  %1105 = vst.msk [vmem:[#allocation8 + $0x8] sm:$0xff] %vm1103_vm1, %v1288_v35 }
 0x2d5   :  { %v1054_v36 = vpop.f32.mrf.mxu1  ;;  %v944_v37 = vpop.f32.mrf.mxu0 }
 0x2d6   :  { %1126 = vst.msk [vmem:[#allocation8 + $0xb0] sm:$0xff] %vm1103_vm1, %v1054_v36  ;;  %1104 = vst.msk [vmem:[#allocation8] sm:$0xff] %vm1103_vm1, %v944_v37 }
 0x2d7   :  { %v1324_v38 = vpop.f32.mrf.mxu1 }
 0x2d8   :  { %1129 = vst.msk [vmem:[#allocation8 + $0xc8] sm:$0xff] %vm1103_vm1, %v1324_v38 }
 0x2d9   :  { %v1064_v39 = vpop.f32.mrf.mxu1 }
 0x2da   :  { %1128 = vst.msk [vmem:[#allocation8 + $0xc0] sm:$0xff] %vm1103_vm1, %v1064_v39 }
 0x2db   :  { %v1291_v40 = vpop.f32.mrf.mxu0 }
 0x2dc   :  { %1107 = vst.msk [vmem:[#allocation8 + $0x18] sm:$0xff] %vm1103_vm1, %v1291_v40 }
 0x2dd   :  { %v954_v41 = vpop.f32.mrf.mxu0 }
 0x2de   :  { %1106 = vst.msk [vmem:[#allocation8 + $0x10] sm:$0xff] %vm1103_vm1, %v954_v41 }
 0x2df   :  { %v1327_v42 = vpop.f32.mrf.mxu1 }
 0x2e0   :  { %1131 = vst.msk [vmem:[#allocation8 + $0xd8] sm:$0xff] %vm1103_vm1, %v1327_v42 }
 0x2e1   :  { %v1074_v43 = vpop.f32.mrf.mxu1 }
 0x2e2   :  { %1130 = vst.msk [vmem:[#allocation8 + $0xd0] sm:$0xff] %vm1103_vm1, %v1074_v43 }
 0x2e3   :  { %v1294_v44 = vpop.f32.mrf.mxu0 }
 0x2e4   :  { %1109 = vst.msk [vmem:[#allocation8 + $0x28] sm:$0xff] %vm1103_vm1, %v1294_v44 }
 0x2e5   :  { %v964_v45 = vpop.f32.mrf.mxu0 }
 0x2e6   :  { %1108 = vst.msk [vmem:[#allocation8 + $0x20] sm:$0xff] %vm1103_vm1, %v964_v45 }
 0x2e7   :  { %v1330_v46 = vpop.f32.mrf.mxu1 }
 0x2e8   :  { %1133 = vst.msk [vmem:[#allocation8 + $0xe8] sm:$0xff] %vm1103_vm1, %v1330_v46 }
 0x2e9   :  { %v1084_v47 = vpop.f32.mrf.mxu1 }
 0x2ea   :  { %1132 = vst.msk [vmem:[#allocation8 + $0xe0] sm:$0xff] %vm1103_vm1, %v1084_v47 }
 0x2eb   :  { %v1297_v48 = vpop.f32.mrf.mxu0 }
 0x2ec   :  { %1111 = vst.msk [vmem:[#allocation8 + $0x38] sm:$0xff] %vm1103_vm1, %v1297_v48 }
 0x2ed   :  { %v974_v49 = vpop.f32.mrf.mxu0 }
 0x2ee   :  { %1110 = vst.msk [vmem:[#allocation8 + $0x30] sm:$0xff] %vm1103_vm1, %v974_v49 }
 0x2ef   :  { %v1333_v50 = vpop.f32.mrf.mxu1 }
 0x2f0   :  { %1135 = vst.msk [vmem:[#allocation8 + $0xf8] sm:$0xff] %vm1103_vm1, %v1333_v50 }
 0x2f1   :  { %v1094_v51 = vpop.f32.mrf.mxu1 }
 0x2f2   :  { %1134 = vst.msk [vmem:[#allocation8 + $0xf0] sm:$0xff] %vm1103_vm1, %v1094_v51 }
 0x2f3   :  { %1416 = shalt.err (!%p1413_p5)
}
 0x2f4   :  { %1147 = dma.vmem_to_hbm [thread:$0]  %s1142_s2, 4096, %s1564_s3, [#allocation4], %s1433_s17, %s1433_s17, %s1434_s18  }
 0x2f5   :  { %1429 = dma.done.wait [#allocation4], 4096  }
 0x2f6   :  { %1430 = vsyncadd [#allocation4], 4294963200 }
 0x2f7   :  { %1151 = vsyncpa [#allocation3], 1 }
 0x2f8   :  { %1152 = vsyncpa [#allocation6], 1 }
 0x2f9   :  { %1153 = vsyncpa [#allocation4], 1 }

</bundles_post_ra>
